<compile_context>
chip_gen: v6e
topology: v6e:2x2x1
jax: 0.10.0
libtpu: 0.0.40
codegen_flags: <defaults>
</compile_context>

<pallas_src>
import math

import jax
import jax.numpy as jnp
from jax.experimental import pallas as pl
from jax.experimental.pallas import tpu as pltpu


def _round_up(x, m):
    return ((x + m - 1) // m) * m


# ----------------------------------------------------------------------------
# Kernel 1 (cold path, single VMEM-resident call):
#   node features + folding of W1/W2 into the node table.
#   fold = [x_node @ W1^T ; x_node @ W2^T]   shape (2*N_pad, H), bf16
# ----------------------------------------------------------------------------
def node_fold_kernel(z_ref, tag_ref, emb_w_ref, tag_w_ref, props_ref,
                     w_phys_t_ref, b_phys_ref, per_tab_ref, grp_tab_ref,
                     w1_t_ref, w2_t_ref, fold_ref):
    n = z_ref.shape[0]
    n_z = emb_w_ref.shape[0]                         # 85 element types
    n_tag = tag_w_ref.shape[0]                       # 3 tags
    z = z_ref[...]                                   # (N, 1) int32
    tg = tag_ref[...]                                # (N, 1) int32

    # One one-hot over the tiny fixed element table, shared by all per-Z lookups.
    oh_z = (jax.lax.broadcasted_iota(jnp.int32, (n, n_z), 1) == z).astype(jnp.float32)
    oh_t = (jax.lax.broadcasted_iota(jnp.int32, (n, n_tag), 1) == tg).astype(jnp.float32)

    x_emb = jnp.dot(oh_z, emb_w_ref[...], preferred_element_type=jnp.float32)   # (N, main)
    x_tag = jnp.dot(oh_t, tag_w_ref[...], preferred_element_type=jnp.float32)   # (N, tag_h)
    props = jnp.dot(oh_z, props_ref[...], preferred_element_type=jnp.float32)   # (N, n_props)
    x_phys = (jnp.dot(props, w_phys_t_ref[...], preferred_element_type=jnp.float32)
              + b_phys_ref[...])                                                # (N, phys_h)
    x_per = jnp.dot(oh_z, per_tab_ref[...], preferred_element_type=jnp.float32)  # (N, pg_h)
    x_grp = jnp.dot(oh_z, grp_tab_ref[...], preferred_element_type=jnp.float32)  # (N, pg_h)

    # cat order matches the torch module: emb | tag | phys | period | group
    x_node = jnp.concatenate([x_emb, x_tag, x_phys, x_per, x_grp], axis=1)       # (N, H)

    # Fold the first two column blocks of `lin` into per-node tables.
    y1 = jnp.dot(x_node, w1_t_ref[...], preferred_element_type=jnp.float32)      # (N, H)
    y2 = jnp.dot(x_node, w2_t_ref[...], preferred_element_type=jnp.float32)      # (N, H)
    fold_ref[...] = jnp.concatenate([y1, y2], axis=0).astype(fold_ref.dtype)     # (2N, H)


# ----------------------------------------------------------------------------
# Kernel 2 (hot path, gridded over edge tiles, "parallel"):
#   out[e] = swish( fold[i_e] + fold[N + j_e] + W3 @ swish(W_rbf @ rbf_e + b_rbf) + b )
# ----------------------------------------------------------------------------
def edge_kernel(i_ref, j_ref, rbf_ref, fold_ref, w_rbf_t_ref, b_rbf_ref,
                w3_t_ref, b_lin_ref, out_ref):
    two_n = fold_ref.shape[0]
    n_fold = two_n // 2
    e_t = out_ref.shape[0]

    # swish(lin_rbf(rbf)): (E_t, R) @ (R, H) -> (E_t, H), bf16 MXU, f32 accumulation.
    rbf_h = (jnp.dot(rbf_ref[...], w_rbf_t_ref[...],
                     preferred_element_type=jnp.float32) + b_rbf_ref[...])
    rbf_h = rbf_h * pl.reciprocal(1.0 + jnp.exp(-rbf_h), approx=True)

    # Stacked one-hot (E_t, 2N): lanes [0, N) select endpoint i, [N, 2N) select j.
    # A single gather-matmul replaces both endpoint gathers and the W1/W2 matmuls.
    lane = jax.lax.broadcasted_iota(jnp.int32, (e_t, two_n), 1)
    oh = ((lane == i_ref[...]) | (lane == (j_ref[...] + n_fold))).astype(jnp.bfloat16)

    y = (jnp.dot(oh, fold_ref[...], preferred_element_type=jnp.float32)
         + jnp.dot(rbf_h.astype(jnp.bfloat16), w3_t_ref[...],
                   preferred_element_type=jnp.float32)
         + b_lin_ref[...])
    out_ref[...] = y * pl.reciprocal(1.0 + jnp.exp(-y), approx=True)   # lane-dense store


# ----------------------------------------------------------------------------
# Generation-aware sizing helpers
# ----------------------------------------------------------------------------
def _vmem_limit_bytes():
    cap = 64 * 1024 * 1024                       # conservative default (v7x-sized VMEM)
    try:
        info = pltpu.get_tpu_info()
        for name in ("vmem_capacity_bytes", "vmem_size_bytes", "vmem_bytes"):
            v = getattr(info, name, None)
            if v:
                cap = int(v)
                break
    except Exception:
        pass
    # ~96 MiB scoped limit on 128-MiB parts (v5e/v6e), ~48 MiB on v7x (64 MiB).
    return min(96 * 1024 * 1024, (cap * 3) // 4)


def _edge_vmem_bytes(e_t, n_pad, hidden, num_radial):
    two_n = 2 * n_pad
    resident = (two_n * hidden * 2               # folded node table (bf16, single buffer)
                + num_radial * hidden * 2        # W_rbf^T (bf16)
                + hidden * hidden * 2            # W3^T (bf16)
                + 2 * hidden * 4)                # biases (f32)
    pipelined = 2 * (2 * e_t * 4                 # i, j indices (double buffered)
                     + e_t * num_radial * 2      # rbf (bf16)
                     + e_t * hidden * 4)         # output (f32)
    temps = (e_t * two_n * (4 + 2)               # lane iota (i32) + one-hot (bf16)
             + 4 * e_t * hidden * 4)             # rbf_h / y intermediates
    return resident + pipelined + temps


def _choose_edge_tile(n_edges, n_pad, hidden, num_radial, vmem_budget):
    # v7x megacore: make sure the "parallel" grid has >= 2 programs when possible.
    if n_edges >= 256:
        cap = max(128, ((n_edges // 2) // 128) * 128)
    else:
        cap = 128
    for e_t in (1024, 512, 256, 128):
        if e_t > cap:
            continue
        if _edge_vmem_bytes(e_t, n_pad, hidden, num_radial) <= vmem_budget:
            return e_t
    return 128


# ----------------------------------------------------------------------------
# Wrapper
# ----------------------------------------------------------------------------
def advanced_embedding_block(z, tag, rbf, i, j, params, *, edge_tile=None):
    """Pallas forward of AdvancedEmbeddingBlock; returns (E, hidden) edge features."""
    n_nodes = z.shape[0]
    n_edges, num_radial = rbf.shape
    hidden = params["w_rbf"].shape[0]
    main_ch = params["emb_w"].shape[1]
    tag_ch = params["tag_w"].shape[1]
    phys_ch = params["w_phys"].shape[0]
    pg_ch = params["period_tab"].shape[1]
    assert main_ch + tag_ch + phys_ch + 2 * pg_ch == hidden, "channel split mismatch"

    # ---- stage 1: node features + W1/W2 folding (cold path) ------------------
    n_pad = _round_up(max(n_nodes, 8), 8)
    pad_n = n_pad - n_nodes
    z2d = jnp.pad(z.astype(jnp.int32), (0, pad_n)).reshape(n_pad, 1)
    tag2d = jnp.pad(tag.astype(jnp.int32), (0, pad_n)).reshape(n_pad, 1)

    w_lin = params["w_lin"]                       # (H, 3H), torch layout
    w1_t = w_lin[:, :hidden].T                    # (H, H) for x_node @ W1^T
    w2_t = w_lin[:, hidden:2 * hidden].T
    w3_t = w_lin[:, 2 * hidden:].T.astype(jnp.bfloat16)

    fold = pl.pallas_call(
        node_fold_kernel,
        out_shape=jax.ShapeDtypeStruct((2 * n_pad, hidden), jnp.bfloat16),
        in_specs=[pl.BlockSpec(memory_space=pltpu.MemorySpace.VMEM)] * 11,
        out_specs=pl.BlockSpec(memory_space=pltpu.MemorySpace.VMEM),
    )(z2d, tag2d,
      params["emb_w"], params["tag_w"], params["properties"],
      params["w_phys"].T, params["b_phys"].reshape(1, -1),
      params["period_tab"], params["group_tab"],
      w1_t, w2_t)

    # ---- stage 2: per-edge hot path (gridded + pipelined + megacore) ----------
    vmem_limit = _vmem_limit_bytes()
    if edge_tile is None:
        e_t = _choose_edge_tile(n_edges, n_pad, hidden, num_radial, vmem_limit // 2)
    else:
        assert edge_tile % 128 == 0, "edge tile must be a multiple of 128"
        e_t = edge_tile
    e_pad = _round_up(n_edges, e_t)
    pad_e = e_pad - n_edges

    i2d = jnp.pad(i.astype(jnp.int32), (0, pad_e)).reshape(e_pad, 1)
    j2d = jnp.pad(j.astype(jnp.int32), (0, pad_e)).reshape(e_pad, 1)
    rbf_p = jnp.pad(rbf, ((0, pad_e), (0, 0))).astype(jnp.bfloat16)   # natural (E, R) layout

    w_rbf_t = params["w_rbf"].T.astype(jnp.bfloat16)                  # (R, H)
    b_rbf = params["b_rbf"].reshape(1, -1)                            # f32
    b_lin = params["b_lin"].reshape(1, -1)                            # f32

    flops = 2 * e_pad * hidden * (num_radial + 2 * n_pad + hidden)
    transcendentals = 4 * e_pad * hidden
    bytes_accessed = (e_pad * hidden * 4 + e_pad * num_radial * 2 + 8 * e_pad
                      + 2 * n_pad * hidden * 2
                      + (num_radial + hidden) * hidden * 2 + 2 * hidden * 4)

    def _run_edge(single_buffer_invariants):
        inv = ({"pipeline_mode": pl.Buffered(1)} if single_buffer_invariants else {})
        return pl.pallas_call(
            edge_kernel,
            out_shape=jax.ShapeDtypeStruct((e_pad, hidden), jnp.float32),
            grid=(e_pad // e_t,),
            in_specs=[
                pl.BlockSpec((e_t, 1), lambda e: (e, 0)),                      # i indices
                pl.BlockSpec((e_t, 1), lambda e: (e, 0)),                      # j indices
                pl.BlockSpec((e_t, num_radial), lambda e: (e, 0)),             # rbf (bf16)
                pl.BlockSpec((2 * n_pad, hidden), lambda e: (0, 0), **inv),    # folded table
                pl.BlockSpec((num_radial, hidden), lambda e: (0, 0), **inv),   # W_rbf^T
                pl.BlockSpec((1, hidden), lambda e: (0, 0), **inv),            # b_rbf
                pl.BlockSpec((hidden, hidden), lambda e: (0, 0), **inv),       # W3^T
                pl.BlockSpec((1, hidden), lambda e: (0, 0), **inv),            # b_lin
            ],
            out_specs=pl.BlockSpec((e_t, hidden), lambda e: (e, 0)),
            compiler_params=pltpu.CompilerParams(
                dimension_semantics=("parallel",),      # megacore split on v7x
                vmem_limit_bytes=vmem_limit,
            ),
            cost_estimate=pl.CostEstimate(flops=int(flops),
                                          transcendentals=int(transcendentals),
                                          bytes_accessed=int(bytes_accessed)),
        )(i2d, j2d, rbf_p, fold, w_rbf_t, b_rbf, w3_t, b_lin)

    try:
        out = _run_edge(True)       # single-buffer the grid-invariant inputs
    except Exception:
        out = _run_edge(False)      # fallback: default double buffering (still correct)

    return out[:n_edges]            # (E, hidden) -- no output transpose


# ----------------------------------------------------------------------------
# Pure-JAX reference of AdvancedEmbeddingBlock.forward
# ----------------------------------------------------------------------------
def ref_forward(z, tag, rbf, i, j, params):
    x_emb = params["emb_w"][z]
    x_tag = params["tag_w"][tag]
    x_phys = params["properties"][z] @ params["w_phys"].T + params["b_phys"]
    x_per = params["period_tab"][z]
    x_grp = params["group_tab"][z]
    x_ = jnp.concatenate([x_emb, x_tag, x_phys, x_per, x_grp], axis=1)
    rbf_h = rbf @ params["w_rbf"].T + params["b_rbf"]
    rbf_h = rbf_h * jax.nn.sigmoid(rbf_h)
    cat = jnp.concatenate([x_[i], x_[j], rbf_h], axis=1)
    y = cat @ params["w_lin"].T + params["b_lin"]
    return y * jax.nn.sigmoid(y)


if __name__ == "__main__":
    # Small, module-consistent config:
    #   hidden = main_emb + tag_h + phys_h + 2*pg_h = 64 + 16 + 16 + 32 = 128
    num_radial = 16
    hidden_channels = 128
    tag_hidden_channels = 16
    pg_hidden_channels = 16
    phys_hidden_channels = 16          # use_mlp_phys = True
    n_properties = 8                   # PhysEmbedding.n_properties (synthetic table)
    main_channels = (hidden_channels - tag_hidden_channels
                     - phys_hidden_channels - 2 * pg_hidden_channels)
    num_elements = 85
    num_nodes = 64
    num_edges = 512

    key = jax.random.PRNGKey(0)
    ks = jax.random.split(key, 16)
    s3 = math.sqrt(3.0)

    # Parameters: torch Linear weights kept in native [out, in] layout.  The
    # period/group embedding lookups are pre-composed per atomic number Z
    # (period_tab = period_embedding.weight[phys_emb.period]) — parameter-only
    # preprocessing; PhysEmbedding tables are synthesized deterministically.
    params = {
        "emb_w": jax.random.uniform(ks[0], (num_elements, main_channels), jnp.float32, -s3, s3),
        "tag_w": jax.random.uniform(ks[1], (3, tag_hidden_channels), jnp.float32, -s3, s3),
        "properties": jax.random.normal(ks[2], (num_elements, n_properties), jnp.float32) * 0.5,
        "w_phys": jax.random.normal(ks[3], (phys_hidden_channels, n_properties), jnp.float32) * 0.3,
        "b_phys": jax.random.normal(ks[4], (phys_hidden_channels,), jnp.float32) * 0.1,
        "period_tab": jax.random.uniform(ks[5], (num_elements, pg_hidden_channels), jnp.float32, -s3, s3),
        "group_tab": jax.random.uniform(ks[6], (num_elements, pg_hidden_channels), jnp.float32, -s3, s3),
        "w_rbf": jax.random.normal(ks[7], (hidden_channels, num_radial), jnp.float32) * 0.2,
        "b_rbf": jax.random.normal(ks[8], (hidden_channels,), jnp.float32) * 0.1,
        "w_lin": jax.random.normal(ks[9], (hidden_channels, 3 * hidden_channels), jnp.float32) * 0.05,
        "b_lin": jax.random.normal(ks[10], (hidden_channels,), jnp.float32) * 0.1,
    }

    z = jax.random.randint(ks[11], (num_nodes,), 0, num_elements, dtype=jnp.int32)
    tag = jax.random.randint(ks[12], (num_nodes,), 0, 3, dtype=jnp.int32)
    rbf = jax.random.normal(ks[13], (num_edges, num_radial), jnp.float32)
    i = jax.random.randint(ks[14], (num_edges,), 0, num_nodes, dtype=jnp.int32)
    j = jax.random.randint(ks[15], (num_edges,), 0, num_nodes, dtype=jnp.int32)

    out = advanced_embedding_block(z, tag, rbf, i, j, params)
    out = jax.block_until_ready(out)

    expected = ref_forward(z, tag, rbf, i, j, params)
    assert out.shape == (num_edges, hidden_channels)
    # bf16 MXU operands with f32 accumulation -> bf16-level tolerance vs the f32 reference.
    assert jnp.allclose(out, expected, atol=2e-2, rtol=2e-2), "mismatch vs reference"

    print("KERNEL_OK")
</pallas_src>

<mosaic_0001>
module attributes {stable_mosaic.version = 11 : i64} {
  func.func @node_fold_kernel(%arg0: memref<64x1xi32, #tpu.memory_space<vmem>>, %arg1: memref<64x1xi32, #tpu.memory_space<vmem>>, %arg2: memref<85x64xf32, #tpu.memory_space<vmem>>, %arg3: memref<3x16xf32, #tpu.memory_space<vmem>>, %arg4: memref<85x8xf32, #tpu.memory_space<vmem>>, %arg5: memref<8x16xf32, #tpu.memory_space<vmem>>, %arg6: memref<1x16xf32, #tpu.memory_space<vmem>>, %arg7: memref<85x16xf32, #tpu.memory_space<vmem>>, %arg8: memref<85x16xf32, #tpu.memory_space<vmem>>, %arg9: memref<128x128xf32, #tpu.memory_space<vmem>>, %arg10: memref<128x128xf32, #tpu.memory_space<vmem>>, %arg11: memref<128x128xbf16, #tpu.memory_space<vmem>>) attributes {dimension_semantics = [], scalar_prefetch = 0 : i64, scratch_operands = 0 : i64, tpu.core_type = #tpu.core_type<tc>} {
    %c0 = arith.constant 0 : index
    %c0_0 = arith.constant 0 : index
    %0 = vector.load %arg0[%c0, %c0_0] : memref<64x1xi32, #tpu.memory_space<vmem>>, vector<64x1xi32>
    %c0_1 = arith.constant 0 : index
    %c0_2 = arith.constant 0 : index
    %1 = vector.load %arg1[%c0_1, %c0_2] : memref<64x1xi32, #tpu.memory_space<vmem>>, vector<64x1xi32>
    %2 = tpu.iota {dimensions = array<i32: 1>} : vector<64x85xi32>
    %3 = vector.broadcast %0 : vector<64x1xi32> to vector<64x85xi32>
    %4 = arith.cmpi eq, %2, %3 : vector<64x85xi32>
    %5 = arith.extui %4 : vector<64x85xi1> to vector<64x85xi32>
    %6 = arith.sitofp %5 : vector<64x85xi32> to vector<64x85xf32>
    %7 = tpu.iota {dimensions = array<i32: 1>} : vector<64x3xi32>
    %8 = vector.broadcast %1 : vector<64x1xi32> to vector<64x3xi32>
    %9 = arith.cmpi eq, %7, %8 : vector<64x3xi32>
    %10 = arith.extui %9 : vector<64x3xi1> to vector<64x3xi32>
    %11 = arith.sitofp %10 : vector<64x3xi32> to vector<64x3xf32>
    %c0_3 = arith.constant 0 : index
    %c0_4 = arith.constant 0 : index
    %12 = vector.load %arg2[%c0_3, %c0_4] : memref<85x64xf32, #tpu.memory_space<vmem>>, vector<85x64xf32>
    %cst = arith.constant dense<0.000000e+00> : vector<64x64xf32>
    %13 = tpu.matmul %6, %12, %cst {dimension_numbers = #tpu.dot_dimension_numbers<[1], [0], [0], [1], [0, 0, 1, 1], [], []>} : vector<64x85xf32>, vector<85x64xf32>, vector<64x64xf32> -> vector<64x64xf32>
    %c0_5 = arith.constant 0 : index
    %c0_6 = arith.constant 0 : index
    %14 = vector.load %arg3[%c0_5, %c0_6] : memref<3x16xf32, #tpu.memory_space<vmem>>, vector<3x16xf32>
    %cst_7 = arith.constant dense<0.000000e+00> : vector<64x16xf32>
    %15 = tpu.matmul %11, %14, %cst_7 {dimension_numbers = #tpu.dot_dimension_numbers<[1], [0], [0], [1], [0, 0, 1, 1], [], []>} : vector<64x3xf32>, vector<3x16xf32>, vector<64x16xf32> -> vector<64x16xf32>
    %c0_8 = arith.constant 0 : index
    %c0_9 = arith.constant 0 : index
    %16 = vector.load %arg4[%c0_8, %c0_9] : memref<85x8xf32, #tpu.memory_space<vmem>>, vector<85x8xf32>
    %cst_10 = arith.constant dense<0.000000e+00> : vector<64x8xf32>
    %17 = tpu.matmul %6, %16, %cst_10 {dimension_numbers = #tpu.dot_dimension_numbers<[1], [0], [0], [1], [0, 0, 1, 1], [], []>} : vector<64x85xf32>, vector<85x8xf32>, vector<64x8xf32> -> vector<64x8xf32>
    %c0_11 = arith.constant 0 : index
    %c0_12 = arith.constant 0 : index
    %18 = vector.load %arg5[%c0_11, %c0_12] : memref<8x16xf32, #tpu.memory_space<vmem>>, vector<8x16xf32>
    %cst_13 = arith.constant dense<0.000000e+00> : vector<64x16xf32>
    %19 = tpu.matmul %17, %18, %cst_13 {dimension_numbers = #tpu.dot_dimension_numbers<[1], [0], [0], [1], [0, 0, 1, 1], [], []>} : vector<64x8xf32>, vector<8x16xf32>, vector<64x16xf32> -> vector<64x16xf32>
    %c0_14 = arith.constant 0 : index
    %c0_15 = arith.constant 0 : index
    %20 = vector.load %arg6[%c0_14, %c0_15] : memref<1x16xf32, #tpu.memory_space<vmem>>, vector<1x16xf32>
    %21 = vector.broadcast %20 : vector<1x16xf32> to vector<64x16xf32>
    %22 = arith.addf %19, %21 : vector<64x16xf32>
    %c0_16 = arith.constant 0 : index
    %c0_17 = arith.constant 0 : index
    %23 = vector.load %arg7[%c0_16, %c0_17] : memref<85x16xf32, #tpu.memory_space<vmem>>, vector<85x16xf32>
    %cst_18 = arith.constant dense<0.000000e+00> : vector<64x16xf32>
    %24 = tpu.matmul %6, %23, %cst_18 {dimension_numbers = #tpu.dot_dimension_numbers<[1], [0], [0], [1], [0, 0, 1, 1], [], []>} : vector<64x85xf32>, vector<85x16xf32>, vector<64x16xf32> -> vector<64x16xf32>
    %c0_19 = arith.constant 0 : index
    %c0_20 = arith.constant 0 : index
    %25 = vector.load %arg8[%c0_19, %c0_20] : memref<85x16xf32, #tpu.memory_space<vmem>>, vector<85x16xf32>
    %cst_21 = arith.constant dense<0.000000e+00> : vector<64x16xf32>
    %26 = tpu.matmul %6, %25, %cst_21 {dimension_numbers = #tpu.dot_dimension_numbers<[1], [0], [0], [1], [0, 0, 1, 1], [], []>} : vector<64x85xf32>, vector<85x16xf32>, vector<64x16xf32> -> vector<64x16xf32>
    %27 = tpu.concatenate %13, %15, %22, %24, %26 in 1 : vector<64x64xf32>, vector<64x16xf32>, vector<64x16xf32>, vector<64x16xf32>, vector<64x16xf32> -> vector<64x128xf32>
    %c0_22 = arith.constant 0 : index
    %c0_23 = arith.constant 0 : index
    %28 = vector.load %arg9[%c0_22, %c0_23] : memref<128x128xf32, #tpu.memory_space<vmem>>, vector<128x128xf32>
    %cst_24 = arith.constant dense<0.000000e+00> : vector<64x128xf32>
    %29 = tpu.matmul %27, %28, %cst_24 {dimension_numbers = #tpu.dot_dimension_numbers<[1], [0], [0], [1], [0, 0, 1, 1], [], []>} : vector<64x128xf32>, vector<128x128xf32>, vector<64x128xf32> -> vector<64x128xf32>
    %c0_25 = arith.constant 0 : index
    %c0_26 = arith.constant 0 : index
    %30 = vector.load %arg10[%c0_25, %c0_26] : memref<128x128xf32, #tpu.memory_space<vmem>>, vector<128x128xf32>
    %cst_27 = arith.constant dense<0.000000e+00> : vector<64x128xf32>
    %31 = tpu.matmul %27, %30, %cst_27 {dimension_numbers = #tpu.dot_dimension_numbers<[1], [0], [0], [1], [0, 0, 1, 1], [], []>} : vector<64x128xf32>, vector<128x128xf32>, vector<64x128xf32> -> vector<64x128xf32>
    %32 = tpu.concatenate %29, %31 in 0 : vector<64x128xf32>, vector<64x128xf32> -> vector<128x128xf32>
    %33 = arith.truncf %32 : vector<128x128xf32> to vector<128x128xbf16>
    %c0_28 = arith.constant 0 : index
    %c0_29 = arith.constant 0 : index
    %34 = vector.load %arg11[%c0_28, %c0_29] : memref<128x128xbf16, #tpu.memory_space<vmem>>, vector<128x128xbf16>
    tpu.vector_store %arg11[%c0_28, %c0_29], %33 {strides = array<i32>} : memref<128x128xbf16, #tpu.memory_space<vmem>>, vector<128x128xbf16>,
    return
  }
}

</mosaic_0001>

<bundles_post_ra>
// kernel: tpu_custom_call.1
= control target key start
LH: loop header
LB: loop body
LE: loop exit
PB: predicated region body
PF: predicated region fallthrough
CT: control target
= control target key end

     0   :  { %v2085_v2 = vmov 0   ;;  %vm189_vm0 = vcmask 1044480   ;;  %vm324_vm1 = vcmask 1042432   ;;  %s2657_s0 = inlined_call_operand.vmem [shape: s32[64,1], index: 0, kind: input, shape index: {}]   ;;  %s2658_s1 = inlined_call_operand.vmem [shape: s32[64,1], index: 1, kind: input, shape index: {}]   ;;  %s2659_s2 = inlined_call_operand.vmem [shape: f32[85,64], index: 2, kind: input, shape index: {}]   ;;  %s2660_s3 = inlined_call_operand.vmem [shape: f32[3,16], index: 3, kind: input, shape index: {}]   ;;  %s2661_s4 = inlined_call_operand.vmem [shape: f32[85,8], index: 4, kind: input, shape index: {}]   ;;  %s2662_s5 = inlined_call_operand.vmem [shape: f32[8,16], index: 5, kind: input, shape index: {}]   ;;  %s2663_s6 = inlined_call_operand.vmem [shape: f32[1,16], index: 6, kind: input, shape index: {}]   ;;  %s2664_s7 = inlined_call_operand.vmem [shape: f32[85,16], index: 7, kind: input, shape index: {}]   ;;  %s2665_s8 = inlined_call_operand.vmem [shape: f32[85,16], index: 8, kind: input, shape index: {}]   ;;  %s2666_s9 = inlined_call_operand.vmem [shape: f32[128,128], index: 9, kind: input, shape index: {}]   ;;  %s2667_s10 = inlined_call_operand.vmem [shape: f32[128,128], index: 10, kind: input, shape index: {}]   ;;  %s2668_s11 = inlined_call_operand.hbm [shape: bf16[128,128], index: 11, kind: output, shape index: {}]  }
   0x1   :  { %v49_v0 = vld [vmem:[%s2658_s1 + $0x10] sm:$0xff]  ;;  %v47_v1 = vld [vmem:[%s2658_s1] sm:$0xff]  ;;  %1982 = vset.pattern.permute.xlu1 %v2085_v2  ;;  %1981 = vset.pattern.permute.xlu0 %v2085_v2  ;;  %v50_v3 = vld [vmem:[%s2658_s1 + $0x18] sm:$0xff] }
   0x2   :  { %112 = vperm.xlu1 %1982, %v49_v0   ;;  %106 = vperm.xlu0 %1981, %v47_v1   ;;  %v48_v4 = vld [vmem:[%s2658_s1 + $0x8] sm:$0xff]  ;;  %v163_v5 = vld [vmem:[%s2659_s2 + $0x50] sm:$0x1f]  ;;  %v298_v7 = vld [vmem:[%s2660_s3] sm:$0x7] }
   0x3   :  { %v162_v6 = vld [vmem:[%s2659_s2 + $0x48] sm:$0xff]  ;;  %v51_v9 = vld [vmem:[%s2658_s1 + $0x20] sm:$0xff]  ;;  %1721 = vmatprep.subr.msk.mxu0 %vm189_vm0, %v163_v5  ;;  %1755 = vmatprep.subr.msk.mxu1 %vm324_vm1, %v298_v7  ;;  %v2184_v10 = vld [vmem:[%s2661_s4 + $0x50] sm:$0x1f] }
   0x4   :  { %v52_v8 = vld [vmem:[%s2658_s1 + $0x28] sm:$0xff]  ;;  %1722 = vmatpush3.msk.msra.mxu0 %vm189_vm0, %v163_v5  ;;  %1756 = vmatpush3.msk.msra.mxu1 %vm324_vm1, %v298_v7  ;;  %v161_v11 = vld [vmem:[%s2659_s2 + $0x40] sm:$0xff] }
   0x5   :  { %1723 = vmatprep.subr.mxu0 %v162_v6  ;;  %1769 = vmatprep.subr.msk.mxu1 %vm189_vm0, %v2184_v10 }
   0x6   :  { %115 = vperm.xlu1 %1982, %v50_v3   ;;  %109 = vperm.xlu0 %1981, %v48_v4  }
   0x7   :  { %16 = vsyncpa [#allocation3], 0  ;;  %v54_v12 = vld [vmem:[%s2658_s1 + $0x38] sm:$0xff]  ;;  %v53_v13 = vld [vmem:[%s2658_s1 + $0x30] sm:$0xff]  ;;  %1724 = vmatpush3.msra.mxu0 %v162_v6  ;;  %v55_v30 = vlaneseq  ;;  %vm299_vm2 = vcmask 23552   ;;  %v2086_v34 = vmov 0.0  }
   0x8   :  { %1725 = vmatprep.subr.mxu0 %v161_v11  ;;  %v160_v14 = vld [vmem:[%s2659_s2 + $0x38] sm:$0xff]  ;;  %v159_v15 = vld [vmem:[%s2659_s2 + $0x30] sm:$0xff]  ;;  %v40_v16 = vld [vmem:[%s2657_s0 + $0x8] sm:$0xff]  ;;  %vm164_vm11 = vcmask 695296   ;;  %s2087_s12 = smov 64   ;;  %s2088_s28 = smov 96  }
   0x9   :  { %1726 = vmatpush3.msra.mxu0 %v161_v11  ;;  %v39_v17 = vld [vmem:[%s2657_s0] sm:$0xff]  ;;  %v158_v18 = vld [vmem:[%s2659_s2 + $0x28] sm:$0xff]  ;;  %v42_v19 = vld [vmem:[%s2657_s0 + $0x18] sm:$0xff]  ;;  %v2246_v31 = vand.u32 127, %v55_v30  ;;  %s2089_s26 = smov 80  }
   0xa   :  { %121 = vperm.xlu1 %1982, %v52_v8   ;;  %118 = vperm.xlu0 %1981, %v51_v9   ;;  %v41_v20 = vld [vmem:[%s2657_s0 + $0x10] sm:$0xff]  ;;  %v157_v21 = vld [vmem:[%s2659_s2 + $0x20] sm:$0xff]  ;;  %v156_v22 = vld [vmem:[%s2659_s2 + $0x18] sm:$0xff] }
   0xb   :  { %1727 = vmatprep.subr.mxu0 %v160_v14  ;;  %v44_v23 = vld [vmem:[%s2657_s0 + $0x28] sm:$0xff]  ;;  %v43_v24 = vld [vmem:[%s2657_s0 + $0x20] sm:$0xff]  ;;  %v155_v25 = vld [vmem:[%s2659_s2 + $0x10] sm:$0xff] }
   0xc   :  { %1728 = vmatpush3.msra.mxu0 %v160_v14  ;;  %v46_v26 = vld [vmem:[%s2657_s0 + $0x38] sm:$0xff]  ;;  %v45_v27 = vld [vmem:[%s2657_s0 + $0x30] sm:$0xff]  ;;  %v154_v28 = vld [vmem:[%s2659_s2 + $0x8] sm:$0xff] }
   0xd   :  { %1729 = vmatprep.subr.mxu0 %v159_v15  ;;  %v153_v29 = vld [vmem:[%s2659_s2] sm:$0xff]  ;;  %v442_v40 = vld [vmem:[%s2661_s4 + $0x48] sm:$0xff]  ;;  %v440_v46 = vld [vmem:[%s2661_s4 + $0x38] sm:$0xff] }
   0xe   :  { %127 = vperm.xlu1 %1982, %v54_v12   ;;  %124 = vperm.xlu0 %1981, %v53_v13   ;;  %v441_v44 = vld [vmem:[%s2661_s4 + $0x40] sm:$0xff]  ;;  %v439_v49 = vld [vmem:[%s2661_s4 + $0x30] sm:$0xff]  ;;  %v438_v52 = vld [vmem:[%s2661_s4 + $0x28] sm:$0xff] }
   0xf   :  { %1730 = vmatpush3.msra.mxu0 %v159_v15  ;;  %v437_v55 = vld [vmem:[%s2661_s4 + $0x20] sm:$0xff]  ;;  %v436_v59 = vld [vmem:[%s2661_s4 + $0x18] sm:$0xff]  ;;  %v435_v62 = vld [vmem:[%s2661_s4 + $0x10] sm:$0xff] }
  0x10   :  { %1731 = vmatprep.subr.mxu0 %v158_v18  ;;  %v434_v1 = vld [vmem:[%s2661_s4 + $0x8] sm:$0xff]  ;;  %v433_v4 = vld [vmem:[%s2661_s4] sm:$0xff]  ;;  %v700_v7 = vld [vmem:[%s2664_s7 + $0x50] sm:$0x1f] }
  0x11   :  { %1732 = vmatpush3.msra.mxu0 %v158_v18  ;;  %v698_v13 = vld [vmem:[%s2664_s7 + $0x40] sm:$0xff]  ;;  %v697_v14 = vld [vmem:[%s2664_s7 + $0x38] sm:$0xff]  ;;  %v696_v15 = vld [vmem:[%s2664_s7 + $0x30] sm:$0xff] }
  0x12   :  { %61 = vperm.xlu1 %1982, %v40_v16   ;;  %58 = vperm.xlu0 %1981, %v39_v17   ;;  %v695_v16 = vld [vmem:[%s2664_s7 + $0x28] sm:$0xff]  ;;  %v694_v17 = vld [vmem:[%s2664_s7 + $0x20] sm:$0xff]  ;;  %v693_v18 = vld [vmem:[%s2664_s7 + $0x18] sm:$0xff] }
  0x13   :  { %1733 = vmatprep.subr.mxu0 %v157_v21 }
  0x14   :  { %1734 = vmatpush3.msra.mxu0 %v157_v21  ;;  %v690_v21 = vld [vmem:[%s2664_s7] sm:$0xff] }
  0x15   :  { %1735 = vmatprep.subr.mxu0 %v156_v22 }
  0x16   :  { %67 = vperm.xlu1 %1982, %v42_v19   ;;  %64 = vperm.xlu0 %1981, %v41_v20   ;;  %v692_v19 = vld [vmem:[%s2664_s7 + $0x10] sm:$0xff]  ;;  %v691_v20 = vld [vmem:[%s2664_s7 + $0x8] sm:$0xff] }
  0x17   :  { %1736 = vmatpush3.msra.mxu0 %v156_v22  ;;  %v552_v22 = vld [vmem:[%s2662_s5] sm:$0xff] }
  0x18   :  { %1737 = vmatprep.subr.mxu0 %v155_v25 }
  0x19   :  { %1738 = vmatpush3.msra.mxu0 %v155_v25 }
  0x1a   :  { %73 = vperm.xlu1 %1982, %v44_v23   ;;  %70 = vperm.xlu0 %1981, %v43_v24   ;;  %v819_v23 = vld [vmem:[%s2665_s8 + $0x50] sm:$0x1f] }
  0x1b   :  { %1739 = vmatprep.subr.mxu0 %v154_v28 }
  0x1c   :  { %1740 = vmatpush3.msra.mxu0 %v154_v28 }
  0x1d   :  { %1741 = vmatprep.subr.mxu0 %v153_v29 }
  0x1e   :  { %79 = vperm.xlu1 %1982, %v46_v26   ;;  %76 = vperm.xlu0 %1981, %v45_v27  }
  0x1f   :  { %1742 = vmatpush3.msra.mxu0 %v153_v29 }
  0x20   :  { %1803 = vmatprep.subr.mxu0 %v552_v22 }
  0x7d   :  { %v113_v32 = vpop.permute.xlu1 %112  ;;  %v107_v33 = vpop.permute.xlu0 %106 }
  0x7e   :  { %vm129_vm3 = vcmp.eq.s32.totalorder %v2246_v31, %v107_v33  ;;  %vm131_vm4 = vcmp.eq.s32.totalorder %v2246_v31, %v113_v32 }
  0x7f   :  { %v1438_v35 = vsel %vm129_vm3, 1.0, %v2086_v34  ;;  %v1440_v38 = vsel %vm131_vm4, 1.0, %v2086_v34 }
  0x80   :  { %1757 = vmatprep.mubr.msk.f32.mxu1 %vm299_vm2, %v1438_v35 }
  0x81   :  { %v116_v36 = vpop.permute.xlu1 %115  ;;  %v110_v37 = vpop.permute.xlu0 %109 }
  0x82   :  { %vm132_vm5 = vcmp.eq.s32.totalorder %v2246_v31, %v116_v36  ;;  %vm130_vm6 = vcmp.eq.s32.totalorder %v2246_v31, %v110_v37 }
  0x83   :  { %v1439_v39 = vsel %vm130_vm6, 1.0, %v2086_v34  ;;  %v1441_v41 = vsel %vm132_vm5, 1.0, %v2086_v34  ;;  %vm560_vm5 = vcmask 64512   ;;  %vm1065_vm6 = vcmask 654336  }
  0x84   :  { %1758 = vmatmul.mubr.msk.f32.vlgmr.msra.gmra.mxu1 %vm299_vm2, %v1439_v39 }
  0x85   :  { %1770 = vmatpush3.msk.msra.mxu1 %vm189_vm0, %v2184_v10  ;;  %v122_v42 = vpop.permute.xlu1 %121  ;;  %v119_v43 = vpop.permute.xlu0 %118  ;;  %1760 = vmatprep.mubr.msk.f32.mxu1 %vm299_vm2, %v1440_v38  ;;  %v699_v10 = vld [vmem:[%s2664_s7 + $0x48] sm:$0xff] }
  0x86   :  { %1771 = vmatprep.subr.mxu1 %v442_v40  ;;  %vm133_vm7 = vcmp.eq.s32.totalorder %v2246_v31, %v119_v43  ;;  %vm134_vm8 = vcmp.eq.s32.totalorder %v2246_v31, %v122_v42  ;;  %v818_v38 = vld [vmem:[%s2665_s8 + $0x48] sm:$0xff]  ;;  %v816_v42 = vld [vmem:[%s2665_s8 + $0x38] sm:$0xff] }
  0x87   :  { %v1442_v45 = vsel %vm133_vm7, 1.0, %v2086_v34  ;;  %1772 = vmatpush3.msra.mxu1 %v442_v40  ;;  %v1443_v50 = vsel %vm134_vm8, 1.0, %v2086_v34  ;;  %v817_v40 = vld [vmem:[%s2665_s8 + $0x40] sm:$0xff]  ;;  %vm1074_vm7 = vcmask 785408   ;;  %vm1083_vm8 = vcmask 916480  }
  0x88   :  { %1773 = vmatprep.subr.mxu1 %v441_v44  ;;  %1761 = vmatmul.mubr.msk.f32.gmra.mxu1 %vm299_vm2, %v1441_v41 }
  0x89   :  { %1774 = vmatpush3.msra.mxu1 %v441_v44  ;;  %v128_v47 = vpop.permute.xlu1 %127  ;;  %1763 = vmatprep.mubr.msk.f32.mxu1 %vm299_vm2, %v1442_v45  ;;  %v125_v48 = vpop.permute.xlu0 %124  ;;  %v815_v44 = vld [vmem:[%s2665_s8 + $0x30] sm:$0xff] }
  0x8a   :  { %1775 = vmatprep.subr.mxu1 %v440_v46  ;;  %vm135_vm9 = vcmp.eq.s32.totalorder %v2246_v31, %v125_v48  ;;  %vm136_vm10 = vcmp.eq.s32.totalorder %v2246_v31, %v128_v47  ;;  %v813_v48 = vld [vmem:[%s2665_s8 + $0x20] sm:$0xff] }
  0x8b   :  { %v1444_v51 = vsel %vm135_vm9, 1.0, %v2086_v34  ;;  %1776 = vmatpush3.msra.mxu1 %v440_v46  ;;  %v1445_v58 = vsel %vm136_vm10, 1.0, %v2086_v34  ;;  %v814_v46 = vld [vmem:[%s2665_s8 + $0x28] sm:$0xff] }
  0x8c   :  { %1777 = vmatprep.subr.mxu1 %v439_v49  ;;  %1764 = vmatmul.mubr.msk.f32.gmra.mxu1 %vm299_vm2, %v1443_v50  ;;  %v812_v50 = vld [vmem:[%s2665_s8 + $0x18] sm:$0xff] }
  0x8d   :  { %1778 = vmatpush3.msra.mxu1 %v439_v49  ;;  %1766 = vmatprep.mubr.msk.f32.mxu1 %vm299_vm2, %v1444_v51  ;;  %v62_v53 = vpop.permute.xlu1 %61  ;;  %v59_v54 = vpop.permute.xlu0 %58  ;;  %v811_v51 = vld [vmem:[%s2665_s8 + $0x10] sm:$0xff] }
  0x8e   :  { %1779 = vmatprep.subr.mxu1 %v438_v52  ;;  %vm82_vm12 = vcmp.eq.s32.totalorder %v2246_v31, %v62_v53  ;;  %vm81_vm13 = vcmp.eq.s32.totalorder %v2246_v31, %v59_v54  ;;  %v809_v53 = vld [vmem:[%s2665_s8] sm:$0xff] }
  0x8f   :  { %v2293_v56 = vsel %vm82_vm12, 1.0, %v2086_v34  ;;  %v2296_v57 = vsel %vm81_vm13, 1.0, %v2086_v34  ;;  %1780 = vmatpush3.msra.mxu1 %v438_v52  ;;  %v810_v52 = vld [vmem:[%s2665_s8 + $0x8] sm:$0xff] }
  0x90   :  { %1781 = vmatprep.subr.mxu1 %v437_v55  ;;  %1743 = vmatprep.mubr.msk.f32.mxu0 %vm164_vm11, %v2296_v57 }
  0x91   :  { %1767 = vmatmul.mubr.msk.f32.gmra.mxu1 %vm299_vm2, %v1445_v58  ;;  %v68_v60 = vpop.permute.xlu1 %67  ;;  %1744 = vmatmul.mubr.msk.f32.vlgmr.msra.gmra.mxu0 %vm164_vm11, %v2293_v56  ;;  %v65_v61 = vpop.permute.xlu0 %64 }
  0x92   :  { %1782 = vmatpush3.msra.mxu1 %v437_v55  ;;  %vm84_vm14 = vcmp.eq.s32.totalorder %v2246_v31, %v68_v60  ;;  %1791 = vmatprep.mubr.msk.f32.mxu1 %vm164_vm11, %v2296_v57  ;;  %vm83_vm15 = vcmp.eq.s32.totalorder %v2246_v31, %v65_v61 }
  0x93   :  { %1783 = vmatprep.subr.mxu1 %v436_v59  ;;  %v2315_v63 = vsel %vm84_vm14, 1.0, %v2086_v34  ;;  %v2318_v0 = vsel %vm83_vm15, 1.0, %v2086_v34  ;;  %1804 = vmatpush3.msra.mxu0 %v552_v22  ;;  %v1222_v22 = vld [vmem:[%s2667_s10 + $0x48] sm:$0xff] }
  0x94   :  { %1784 = vmatpush3.msra.mxu1 %v436_v59  ;;  %1746 = vmatprep.mubr.msk.f32.mxu0 %vm164_vm11, %v2318_v0 }
  0x95   :  { %1785 = vmatprep.subr.mxu1 %v435_v62  ;;  %v74_v2 = vpop.permute.xlu1 %73  ;;  %1747 = vmatmul.mubr.msk.f32.gmra.mxu0 %vm164_vm11, %v2315_v63  ;;  %v71_v3 = vpop.permute.xlu0 %70 }
  0x96   :  { %1786 = vmatpush3.msra.mxu1 %v435_v62  ;;  %vm86_vm1 = vcmp.eq.s32.totalorder %v2246_v31, %v74_v2  ;;  %vm85_vm2 = vcmp.eq.s32.totalorder %v2246_v31, %v71_v3  ;;  %1851 = vmatprep.subr.msk.mxu0 %vm189_vm0, %v819_v23  ;;  %v1228_v3 = vld [vmem:[%s2667_s10 + $0x78] sm:$0xff] }
  0x97   :  { %1787 = vmatprep.subr.mxu1 %v434_v1  ;;  %v2333_v5 = vsel %vm86_vm1, 1.0, %v2086_v34  ;;  %v2336_v6 = vsel %vm85_vm2, 1.0, %v2086_v34 }
  0x98   :  { %1788 = vmatpush3.msra.mxu1 %v434_v1  ;;  %1749 = vmatprep.mubr.msk.f32.mxu0 %vm164_vm11, %v2336_v6 }
  0x99   :  { %1789 = vmatprep.subr.mxu1 %v433_v4  ;;  %v80_v8 = vpop.permute.xlu1 %79  ;;  %1750 = vmatmul.mubr.msk.f32.gmra.mxu0 %vm164_vm11, %v2333_v5  ;;  %v77_v9 = vpop.permute.xlu0 %76 }
  0x9a   :  { %1790 = vmatpush3.msra.mxu1 %v433_v4  ;;  %vm88_vm3 = vcmp.eq.s32.totalorder %v2246_v31, %v80_v8  ;;  %vm87_vm4 = vcmp.eq.s32.totalorder %v2246_v31, %v77_v9  ;;  %v1106_v4 = vld [vmem:[%s2666_s9 + $0x70] sm:$0xff]  ;;  %v1104_v8 = vld [vmem:[%s2666_s9 + $0x60] sm:$0xff] }
  0x9b   :  { %1817 = vmatprep.subr.msk.mxu1 %vm189_vm0, %v700_v7  ;;  %v2352_v11 = vsel %vm88_vm3, 1.0, %v2086_v34  ;;  %1792 = vmatmul.mubr.msk.f32.vlgmr.msra.gmra.mxu1 %vm164_vm11, %v2293_v56  ;;  %v2357_v12 = vsel %vm87_vm4, 1.0, %v2086_v34  ;;  %v1225_v9 = vld [vmem:[%s2667_s10 + $0x60] sm:$0xff] }
  0x9c   :  { %1794 = vmatprep.mubr.msk.f32.mxu1 %vm164_vm11, %v2318_v0  ;;  %1818 = vmatpush3.msk.msra.mxu1 %vm189_vm0, %v700_v7  ;;  %v1226_v7 = vld [vmem:[%s2667_s10 + $0x68] sm:$0xff] }
  0x9d   :  { %1819 = vmatprep.subr.mxu1 %v699_v10  ;;  %1752 = vmatprep.mubr.msk.f32.mxu0 %vm164_vm11, %v2357_v12 }
  0x9e   :  { %1820 = vmatpush3.msra.mxu1 %v699_v10  ;;  %1753 = vmatmul.mubr.msk.f32.gmra.mxu0 %vm164_vm11, %v2352_v11  ;;  %v1103_v10 = vld [vmem:[%s2666_s9 + $0x58] sm:$0xff] }
  0x9f   :  { %1795 = vmatmul.mubr.msk.f32.gmra.mxu1 %vm164_vm11, %v2315_v63  ;;  %1821 = vmatprep.subr.mxu1 %v698_v13 }
  0xa0   :  { %1797 = vmatprep.mubr.msk.f32.mxu1 %vm164_vm11, %v2336_v6  ;;  %1822 = vmatpush3.msra.mxu1 %v698_v13 }
  0xa1   :  { %1823 = vmatprep.subr.mxu1 %v697_v14 }
  0xa2   :  { %1824 = vmatpush3.msra.mxu1 %v697_v14 }
  0xa3   :  { %1798 = vmatmul.mubr.msk.f32.gmra.mxu1 %vm164_vm11, %v2333_v5  ;;  %1825 = vmatprep.subr.mxu1 %v696_v15 }
  0xa4   :  { %1800 = vmatprep.mubr.msk.f32.mxu1 %vm164_vm11, %v2357_v12  ;;  %1826 = vmatpush3.msra.mxu1 %v696_v15 }
  0xa5   :  { %1827 = vmatprep.subr.mxu1 %v695_v16 }
  0xa6   :  { %1828 = vmatpush3.msra.mxu1 %v695_v16 }
  0xa7   :  { %1801 = vmatmul.mubr.msk.f32.gmra.mxu1 %vm164_vm11, %v2352_v11  ;;  %1829 = vmatprep.subr.mxu1 %v694_v17 }
  0xa8   :  { %1830 = vmatpush3.msra.mxu1 %v694_v17  ;;  %1839 = vmatprep.mubr.msk.f32.mxu1 %vm164_vm11, %v2296_v57 }
  0xa9   :  { %1831 = vmatprep.subr.mxu1 %v693_v18 }
  0xaa   :  { %1832 = vmatpush3.msra.mxu1 %v693_v18 }
  0xab   :  { %1833 = vmatprep.subr.mxu1 %v692_v19 }
  0xac   :  { %1834 = vmatpush3.msra.mxu1 %v692_v19  ;;  %v1102_v19 = vld [vmem:[%s2666_s9 + $0x50] sm:$0xff] }
  0xad   :  { %1835 = vmatprep.subr.mxu1 %v691_v20 }
  0xae   :  { %1836 = vmatpush3.msra.mxu1 %v691_v20  ;;  %v1223_v20 = vld [vmem:[%s2667_s10 + $0x50] sm:$0xff] }
  0xaf   :  { %1837 = vmatprep.subr.mxu1 %v690_v21 }
  0xb0   :  { %1838 = vmatpush3.msra.mxu1 %v690_v21  ;;  %v1101_v21 = vld [vmem:[%s2666_s9 + $0x48] sm:$0xff] }
  0xb1   :  { %1840 = vmatmul.mubr.msk.f32.vlgmr.msra.gmra.mxu1 %vm164_vm11, %v2293_v56 }
  0xb2   :  { %1842 = vmatprep.mubr.msk.f32.mxu1 %vm164_vm11, %v2318_v0 }
  0xb5   :  { %1843 = vmatmul.mubr.msk.f32.gmra.mxu1 %vm164_vm11, %v2315_v63 }
  0xb6   :  { %1845 = vmatprep.mubr.msk.f32.mxu1 %vm164_vm11, %v2336_v6 }
  0xb9   :  { %1846 = vmatmul.mubr.msk.f32.gmra.mxu1 %vm164_vm11, %v2333_v5 }
  0xba   :  { %1848 = vmatprep.mubr.msk.f32.mxu1 %vm164_vm11, %v2357_v12 }
  0xbd   :  { %1849 = vmatmul.mubr.msk.f32.gmra.mxu1 %vm164_vm11, %v2352_v11 }
 0x144   :  { %v1759_v24 = vpop.f32.mrf.mxu1 }
 0x146   :  { %v394_v25 = vpop.f32.mrf.mxu1 }
 0x147   :  { %v1983_v26 = vpack.i.bf16 %v1759_v24, %v394_v25  ;;  %v1100_v24 = vld [vmem:[%s2666_s9 + $0x40] sm:$0xff] }
 0x148   :  { %v1762_v27 = vpop.f32.mrf.mxu1  ;;  %v1221_v25 = vld [vmem:[%s2667_s10 + $0x40] sm:$0xff] }
 0x149   :  { %1984 = vrot.lane.b32.xlu0 %v1983_v26, %s2087_s12  ;;  %v1099_v26 = vld [vmem:[%s2666_s9 + $0x38] sm:$0xff] }
 0x14a   :  { %v404_v28 = vpop.f32.mrf.mxu1 }
 0x14b   :  { %v1988_v29 = vpack.i.bf16 %v1762_v27, %v404_v28  ;;  %v1220_v27 = vld [vmem:[%s2667_s10 + $0x38] sm:$0xff] }
 0x14c   :  { %v1765_v30 = vpop.f32.mrf.mxu1 }
 0x14d   :  { %1989 = vrot.lane.b32.xlu0 %v1988_v29, %s2087_s12  ;;  %v1473_v29 = vld [vmem:[%s2663_s6] ss:$0 sm:$0xff] }
 0x14e   :  { %v414_v31 = vpop.f32.mrf.mxu1 }
 0x14f   :  { %v1993_v32 = vpack.i.bf16 %v1765_v30, %v414_v31  ;;  %v1098_v31 = vld [vmem:[%s2666_s9 + $0x30] sm:$0xff] }
 0x151   :  { %v1768_v33 = vpop.f32.mrf.mxu1  ;;  %1994 = vrot.lane.b32.xlu0 %v1993_v32, %s2087_s12  ;;  %v1219_v32 = vld [vmem:[%s2667_s10 + $0x30] sm:$0xff] }
 0x153   :  { %v424_v34 = vpop.f32.mrf.mxu1 }
 0x154   :  { %v1998_v35 = vpack.i.bf16 %v1768_v33, %v424_v34 }
 0x156   :  { %1999 = vrot.lane.b32.xlu0 %v1998_v35, %s2087_s12  ;;  %v1097_v35 = vld [vmem:[%s2666_s9 + $0x28] sm:$0xff] }
 0x15b   :  { %v1793_v36 = vpop.f32.mrf.mxu1 }
 0x15d   :  { %v513_v37 = vpop.f32.mrf.mxu1 }
 0x15e   :  { %1805 = vmatprep.mubr.msk.f32.mxu0 %vm560_vm5, %v513_v37 }
 0x15f   :  { %v1796_v39 = vpop.f32.mrf.mxu1  ;;  %1806 = vmatmul.mubr.msk.f32.vlgmr.msra.gmra.mxu0 %vm560_vm5, %v1793_v36  ;;  %v1218_v36 = vld [vmem:[%s2667_s10 + $0x28] sm:$0xff] }
 0x160   :  { %1852 = vmatpush3.msk.msra.mxu0 %vm189_vm0, %v819_v23  ;;  %vm1056_vm0 = vcmask 523264  }
 0x161   :  { %1853 = vmatprep.subr.mxu0 %v818_v38  ;;  %v523_v41 = vpop.f32.mrf.mxu1 }
 0x162   :  { %1854 = vmatpush3.msra.mxu0 %v818_v38  ;;  %1808 = vmatprep.mubr.msk.f32.mxu0 %vm560_vm5, %v523_v41  ;;  %v1217_v41 = vld [vmem:[%s2667_s10 + $0x20] sm:$0xff] }
 0x163   :  { %1855 = vmatprep.subr.mxu0 %v817_v40  ;;  %v1799_v43 = vpop.f32.mrf.mxu1  ;;  %1809 = vmatmul.mubr.msk.f32.gmra.mxu0 %vm560_vm5, %v1796_v39 }
 0x164   :  { %1856 = vmatpush3.msra.mxu0 %v817_v40  ;;  %v1096_v40 = vld [vmem:[%s2666_s9 + $0x20] sm:$0xff] }
 0x165   :  { %1857 = vmatprep.subr.mxu0 %v816_v42  ;;  %v533_v45 = vpop.f32.mrf.mxu1 }
 0x166   :  { %1858 = vmatpush3.msra.mxu0 %v816_v42  ;;  %1811 = vmatprep.mubr.msk.f32.mxu0 %vm560_vm5, %v533_v45 }
 0x167   :  { %1859 = vmatprep.subr.mxu0 %v815_v44  ;;  %v1802_v47 = vpop.f32.mrf.mxu1  ;;  %1812 = vmatmul.mubr.msk.f32.gmra.mxu0 %vm560_vm5, %v1799_v43 }
 0x168   :  { %1860 = vmatpush3.msra.mxu0 %v815_v44  ;;  %v1095_v44 = vld [vmem:[%s2666_s9 + $0x18] sm:$0xff] }
 0x169   :  { %1861 = vmatprep.subr.mxu0 %v814_v46  ;;  %v543_v49 = vpop.f32.mrf.mxu1 }
 0x16a   :  { %1862 = vmatpush3.msra.mxu0 %v814_v46  ;;  %1814 = vmatprep.mubr.msk.f32.mxu0 %vm560_vm5, %v543_v49  ;;  %v1216_v46 = vld [vmem:[%s2667_s10 + $0x18] sm:$0xff]  ;;  %v1094_v49 = vld [vmem:[%s2666_s9 + $0x10] sm:$0xff] }
 0x16b   :  { %1863 = vmatprep.subr.mxu0 %v813_v48  ;;  %1815 = vmatmul.mubr.msk.f32.gmra.mxu0 %vm560_vm5, %v1802_v47 }
 0x16c   :  { %1864 = vmatpush3.msra.mxu0 %v813_v48  ;;  %1873 = vmatprep.mubr.msk.f32.mxu0 %vm164_vm11, %v2296_v57 }
 0x16d   :  { %1865 = vmatprep.subr.mxu0 %v812_v50 }
 0x16e   :  { %1866 = vmatpush3.msra.mxu0 %v812_v50  ;;  %v1215_v50 = vld [vmem:[%s2667_s10 + $0x10] sm:$0xff] }
 0x16f   :  { %1867 = vmatprep.subr.mxu0 %v811_v51 }
 0x170   :  { %1868 = vmatpush3.msra.mxu0 %v811_v51 }
 0x171   :  { %1869 = vmatprep.subr.mxu0 %v810_v52  ;;  %v1841_v54 = vpop.f32.mrf.mxu1 }
 0x172   :  { %1870 = vmatpush3.msra.mxu0 %v810_v52 }
 0x173   :  { %1871 = vmatprep.subr.mxu0 %v809_v53  ;;  %v770_v55 = vpop.f32.mrf.mxu1 }
 0x174   :  { %v2003_v57 = vpack.i.bf16 %v1841_v54, %v770_v55  ;;  %1872 = vmatpush3.msra.mxu0 %v809_v53  ;;  %v1093_v55 = vld [vmem:[%s2666_s9 + $0x8] sm:$0xff] }
 0x175   :  { %1874 = vmatmul.mubr.msk.f32.vlgmr.msra.gmra.mxu0 %vm164_vm11, %v2293_v56  ;;  %v1844_v58 = vpop.f32.mrf.mxu1  ;;  %1929 = vmatprep.subr.mxu0 %v1228_v3 }
 0x176   :  { %1876 = vmatprep.mubr.msk.f32.mxu0 %vm164_vm11, %v2318_v0  ;;  %2004 = vrot.lane.b32.xlu0 %v2003_v57, %s2088_s28  ;;  %v1214_v57 = vld [vmem:[%s2667_s10 + $0x8] sm:$0xff] }
 0x177   :  { %v780_v59 = vpop.f32.mrf.mxu1  ;;  %1930 = vmatpush3.msra.mxu0 %v1228_v3 }
 0x178   :  { %v2008_v60 = vpack.i.bf16 %v1844_v58, %v780_v59  ;;  %v1092_v59 = vld [vmem:[%s2666_s9] sm:$0xff] }
 0x179   :  { %1877 = vmatmul.mubr.msk.f32.gmra.mxu0 %vm164_vm11, %v2315_v63  ;;  %v1847_v61 = vpop.f32.mrf.mxu1  ;;  %v1107_v63 = vld [vmem:[%s2666_s9 + $0x78] sm:$0xff] }
 0x17a   :  { %1879 = vmatprep.mubr.msk.f32.mxu0 %vm164_vm11, %v2336_v6  ;;  %2009 = vrot.lane.b32.xlu0 %v2008_v60, %s2088_s28  ;;  %v1105_v6 = vld [vmem:[%s2666_s9 + $0x68] sm:$0xff]  ;;  %s2090_s9 = smov 112  }
 0x17b   :  { %v790_v62 = vpop.f32.mrf.mxu1  ;;  %1885 = vmatprep.subr.mxu1 %v1107_v63 }
 0x17c   :  { %v2013_v1 = vpack.i.bf16 %v1847_v61, %v790_v62  ;;  %1886 = vmatpush3.msra.mxu1 %v1107_v63  ;;  %v1213_v62 = vld [vmem:[%s2667_s10] sm:$0xff] }
 0x17d   :  { %1880 = vmatmul.mubr.msk.f32.gmra.mxu0 %vm164_vm11, %v2333_v5  ;;  %v1850_v56 = vpop.f32.mrf.mxu1  ;;  %v1227_v5 = vld [vmem:[%s2667_s10 + $0x70] sm:$0xff]  ;;  %1887 = vmatprep.subr.mxu1 %v1106_v4 }
 0x17e   :  { %1882 = vmatprep.mubr.msk.f32.mxu0 %vm164_vm11, %v2357_v12  ;;  %2014 = vrot.lane.b32.xlu0 %v2013_v1, %s2088_s28  ;;  %v2515_v12 = vpop.f32.mrf.mxu0 }
 0x17f   :  { %v800_v0 = vpop.f32.mrf.mxu1  ;;  %1931 = vmatprep.subr.mxu0 %v1227_v5  ;;  %1888 = vmatpush3.msra.mxu1 %v1106_v4 }
 0x180   :  { %v2053_v2 = vpack.i.bf16 %v1850_v56, %v800_v0  ;;  %1932 = vmatpush3.msra.mxu0 %v1227_v5  ;;  %1889 = vmatprep.subr.mxu1 %v1105_v6  ;;  %v2517_v13 = vpop.f32.mrf.mxu0 }
 0x181   :  { %1883 = vmatmul.mubr.msk.f32.gmra.mxu0 %vm164_vm11, %v2352_v11  ;;  %1933 = vmatprep.subr.mxu0 %v1226_v7  ;;  %v1224_v11 = vld [vmem:[%s2667_s10 + $0x58] sm:$0xff]  ;;  %s2091_s10 = smov [#allocation2]  }
 0x182   :  { %2054 = vrot.lane.b32.xlu0 %v2053_v2, %s2088_s28  ;;  %1890 = vmatpush3.msra.mxu1 %v1105_v6  ;;  %v2519_v14 = vpop.f32.mrf.mxu0  ;;  %s1419_s3 = sshll.u32 %s2091_s10, 4  ;;  %s1420_s3 = int_to_ptr.vmem [resolvable:$true] %s1419_s3 }
 0x183   :  { %1934 = vmatpush3.msra.mxu0 %v1226_v7  ;;  %1891 = vmatprep.subr.mxu1 %v1104_v8  ;;  %s2063_s18 = scalar_lea.vmem %s1420_s3, 1024  ;;  %p2068_p1 = scmp.lt.s32.totalorder %s1420_s3, %s1420_s3 }
 0x184   :  { %1935 = vmatprep.subr.mxu0 %v1225_v9  ;;  %1892 = vmatpush3.msra.mxu1 %v1104_v8  ;;  %v2521_v15 = vpop.f32.mrf.mxu0  ;;  %p2064_p0 = scmp.ne.s32.totalorder %s1420_s3, %s2063_s18  ;;  %p2069_p2 = scmp.lt.s32.totalorder %s2063_s18, %s2063_s18 }
 0x185   :  { %1936 = vmatpush3.msra.mxu0 %v1225_v9  ;;  %1893 = vmatprep.subr.mxu1 %v1103_v10 }
 0x186   :  { %1937 = vmatprep.subr.mxu0 %v1224_v11  ;;  %1894 = vmatpush3.msra.mxu1 %v1103_v10  ;;  %v2523_v16 = vpop.f32.mrf.mxu0  ;;  %p2070_p3 = por %p2069_p2, %p2068_p1 }
 0x187   :  { %1938 = vmatpush3.msra.mxu0 %v1224_v11  ;;  %1895 = vmatprep.subr.mxu1 %v1102_v19 }
 0x188   :  { %v2525_v17 = vpop.f32.mrf.mxu0  ;;  %1939 = vmatprep.subr.mxu0 %v1223_v20  ;;  %1896 = vmatpush3.msra.mxu1 %v1102_v19  ;;  %p2071_p4 = pnand %p2070_p3, %p2064_p0 }
 0x189   :  { %1940 = vmatpush3.msra.mxu0 %v1223_v20  ;;  %1897 = vmatprep.subr.mxu1 %v1101_v21 }
 0x18a   :  { %v2527_v18 = vpop.f32.mrf.mxu0  ;;  %1941 = vmatprep.subr.mxu0 %v1222_v22  ;;  %1898 = vmatpush3.msra.mxu1 %v1101_v21 }
 0x18b   :  { %1942 = vmatpush3.msra.mxu0 %v1222_v22  ;;  %1899 = vmatprep.subr.mxu1 %v1100_v24 }
 0x18c   :  { %v2541_v23 = vpop.f32.mrf.mxu0  ;;  %1943 = vmatprep.subr.mxu0 %v1221_v25  ;;  %1900 = vmatpush3.msra.mxu1 %v1100_v24 }
 0x18d   :  { %1944 = vmatpush3.msra.mxu0 %v1221_v25  ;;  %1901 = vmatprep.subr.mxu1 %v1099_v26 }
 0x18e   :  { %1945 = vmatprep.subr.mxu0 %v1220_v27  ;;  %1902 = vmatpush3.msra.mxu1 %v1099_v26 }
 0x18f   :  { %1946 = vmatpush3.msra.mxu0 %v1220_v27  ;;  %1903 = vmatprep.subr.mxu1 %v1098_v31 }
 0x190   :  { %1947 = vmatprep.subr.mxu0 %v1219_v32  ;;  %1904 = vmatpush3.msra.mxu1 %v1098_v31 }
 0x191   :  { %1948 = vmatpush3.msra.mxu0 %v1219_v32  ;;  %1905 = vmatprep.subr.mxu1 %v1097_v35 }
 0x192   :  { %1949 = vmatprep.subr.mxu0 %v1218_v36  ;;  %1906 = vmatpush3.msra.mxu1 %v1097_v35 }
 0x193   :  { %1950 = vmatpush3.msra.mxu0 %v1218_v36  ;;  %1907 = vmatprep.subr.mxu1 %v1096_v40 }
 0x194   :  { %1951 = vmatprep.subr.mxu0 %v1217_v41  ;;  %1908 = vmatpush3.msra.mxu1 %v1096_v40 }
 0x195   :  { %1952 = vmatpush3.msra.mxu0 %v1217_v41  ;;  %1909 = vmatprep.subr.mxu1 %v1095_v44 }
 0x196   :  { %1953 = vmatprep.subr.mxu0 %v1216_v46  ;;  %1910 = vmatpush3.msra.mxu1 %v1095_v44 }
 0x197   :  { %1954 = vmatpush3.msra.mxu0 %v1216_v46  ;;  %1911 = vmatprep.subr.mxu1 %v1094_v49 }
 0x198   :  { %1955 = vmatprep.subr.mxu0 %v1215_v50  ;;  %1912 = vmatpush3.msra.mxu1 %v1094_v49 }
 0x199   :  { %1956 = vmatpush3.msra.mxu0 %v1215_v50  ;;  %1913 = vmatprep.subr.mxu1 %v1093_v55 }
 0x19a   :  { %1957 = vmatprep.subr.mxu0 %v1214_v57  ;;  %1914 = vmatpush3.msra.mxu1 %v1093_v55 }
 0x19b   :  { %1958 = vmatpush3.msra.mxu0 %v1214_v57  ;;  %1915 = vmatprep.subr.mxu1 %v1092_v59 }
 0x19c   :  { %1959 = vmatprep.subr.mxu0 %v1213_v62  ;;  %1916 = vmatpush3.msra.mxu1 %v1092_v59 }
 0x19d   :  { %1960 = vmatpush3.msra.mxu0 %v1213_v62 }
 0x1bb   :  { %v1985_v11 = vpop.permute.xlu0 %1984 }
 0x1bc   :  { %v1987_v27 = vunpack.i.h.bf16 %v1985_v11 }
 0x1be   :  { %v1058_v35 = vsel %vm1056_vm0, %v2515_v12, %v1987_v27 }
 0x1bf   :  { %v1990_v19 = vpop.permute.xlu0 %1989 }
 0x1c0   :  { %v1992_v32 = vunpack.i.h.bf16 %v1990_v19 }
 0x1c2   :  { %v1060_v46 = vsel %vm1056_vm0, %v2519_v14, %v1992_v32 }
 0x1c3   :  { %v1995_v21 = vpop.permute.xlu0 %1994 }
 0x1c8   :  { %v2604_v24 = vpop.permute.xlu0 %1999 }
 0x1c9   :  { %v2001_v62 = vunpack.i.l.bf16 %v2604_v24 }
 0x1e8   :  { %v2005_v26 = vpop.permute.xlu0 %2004 }
 0x1e9   :  { %v2006_v44 = vunpack.i.l.bf16 %v2005_v26 }
 0x21f   :  { %v1807_v28 = vpop.f32.mrf.mxu0 }
 0x220   :  { %v657_v33 = vadd.f32 %v1807_v28, %v1473_v29  ;;  %v1986_v28 = vunpack.i.l.bf16 %v1985_v11 }
 0x221   :  { %v651_v30 = vpop.f32.mrf.mxu0 }
 0x222   :  { %v652_v34 = vadd.f32 %v1473_v29, %v651_v30  ;;  %v1057_v36 = vsel %vm1056_vm0, %v2517_v13, %v1986_v28 }
 0x223   :  { %v1810_v37 = vpop.f32.mrf.mxu0 }
 0x224   :  { %v2018_v38 = vpack.i.bf16 %v657_v33, %v652_v34  ;;  %v667_v42 = vadd.f32 %v1810_v37, %v1473_v29  ;;  %v1991_v33 = vunpack.i.l.bf16 %v1990_v19  ;;  %v2010_v34 = vpop.permute.xlu0 %2009  ;;  %v1997_v37 = vunpack.i.h.bf16 %v1995_v21 }
 0x225   :  { %v661_v39 = vpop.f32.mrf.mxu0  ;;  %v2011_v59 = vunpack.i.l.bf16 %v2010_v34 }
 0x226   :  { %v662_v43 = vadd.f32 %v1473_v29, %v661_v39  ;;  %2019 = vrot.lane.b32.xlu1 %v2018_v38, %s2089_s26  ;;  %v1059_v12 = vsel %vm1056_vm0, %v2521_v15, %v1991_v33  ;;  %v1062_v15 = vsel %vm1056_vm0, %v2523_v16, %v1997_v37 }
 0x227   :  { %v1813_v45 = vpop.f32.mrf.mxu0 }
 0x228   :  { %v2023_v47 = vpack.i.bf16 %v667_v42, %v662_v43  ;;  %v677_v51 = vadd.f32 %v1813_v45, %v1473_v29  ;;  %v1996_v42 = vunpack.i.l.bf16 %v1995_v21  ;;  %v2007_v43 = vunpack.i.h.bf16 %v2005_v26 }
 0x229   :  { %v671_v48 = vpop.f32.mrf.mxu0 }
 0x22a   :  { %v672_v52 = vadd.f32 %v1473_v29, %v671_v48  ;;  %2024 = vrot.lane.b32.xlu1 %v2023_v47, %s2089_s26  ;;  %v1061_v57 = vsel %vm1056_vm0, %v2525_v17, %v1996_v42 }
 0x22b   :  { %v1816_v53 = vpop.f32.mrf.mxu0 }
 0x22c   :  { %v2028_v54 = vpack.i.bf16 %v677_v51, %v672_v52  ;;  %v687_v60 = vadd.f32 %v1816_v53, %v1473_v29  ;;  %v2015_v52 = vpop.permute.xlu0 %2014 }
 0x22d   :  { %v681_v58 = vpop.f32.mrf.mxu0 }
 0x22e   :  { %v682_v61 = vadd.f32 %v1473_v29, %v681_v58  ;;  %2029 = vrot.lane.b32.xlu1 %v2028_v54, %s2089_s26  ;;  %v2012_v58 = vunpack.i.h.bf16 %v2010_v34 }
 0x230   :  { %v2033_v1 = vpack.i.bf16 %v687_v60, %v682_v61  ;;  %v2002_v61 = vunpack.i.h.bf16 %v2604_v24 }
 0x232   :  { %2034 = vrot.lane.b32.xlu1 %v2033_v1, %s2089_s26  ;;  %v1064_v19 = vsel %vm1056_vm0, %v2527_v18, %v2002_v61 }
 0x235   :  { %v1875_v56 = vpop.f32.mrf.mxu0 }
 0x237   :  { %v889_v0 = vpop.f32.mrf.mxu0 }
 0x238   :  { %v2038_v2 = vpack.i.bf16 %v1875_v56, %v889_v0 }
 0x239   :  { %v1878_v63 = vpop.f32.mrf.mxu0 }
 0x23a   :  { %2039 = vrot.lane.b32.xlu1 %v2038_v2, %s2090_s9 }
 0x23b   :  { %v899_v3 = vpop.f32.mrf.mxu0 }
 0x23c   :  { %v2043_v4 = vpack.i.bf16 %v1878_v63, %v899_v3 }
 0x23d   :  { %v1881_v5 = vpop.f32.mrf.mxu0 }
 0x23e   :  { %2044 = vrot.lane.b32.xlu1 %v2043_v4, %s2090_s9 }
 0x23f   :  { %v909_v6 = vpop.f32.mrf.mxu0 }
 0x240   :  { %v2048_v7 = vpack.i.bf16 %v1881_v5, %v909_v6  ;;  %v2017_v6 = vunpack.i.h.bf16 %v2015_v52 }
 0x241   :  { %v1884_v8 = vpop.f32.mrf.mxu0 }
 0x242   :  { %2049 = vrot.lane.b32.xlu1 %v2048_v7, %s2090_s9  ;;  %v2016_v7 = vunpack.i.l.bf16 %v2015_v52 }
 0x243   :  { %v919_v9 = vpop.f32.mrf.mxu0 }
 0x244   :  { %v2058_v10 = vpack.i.bf16 %v1884_v8, %v919_v9  ;;  %v2055_v9 = vpop.permute.xlu0 %2054 }
 0x245   :  { %v2057_v28 = vunpack.i.h.bf16 %v2055_v9 }
 0x246   :  { %2059 = vrot.lane.b32.xlu1 %v2058_v10, %s2090_s9 }
 0x298   :  { %v2020_v20 = vpop.permute.xlu1 %2019 }
 0x299   :  { %v2022_v29 = vunpack.i.h.bf16 %v2020_v20  ;;  %v2021_v30 = vunpack.i.l.bf16 %v2020_v20  ;;  %v1063_v20 = vsel %vm1056_vm0, %v2541_v23, %v2001_v62 }
 0x29b   :  { %v1067_v38 = vsel %vm1065_vm6, %v1058_v35, %v2022_v29  ;;  %v1066_v41 = vsel %vm1065_vm6, %v1057_v36, %v2021_v30  ;;  %v2056_v29 = vunpack.i.l.bf16 %v2055_v9 }
 0x29c   :  { %v2025_v22 = vpop.permute.xlu1 %2024  ;;  %v1075_v50 = vsel %vm1074_vm7, %v1066_v41, %v2006_v44  ;;  %v1076_v51 = vsel %vm1074_vm7, %v1067_v38, %v2007_v43 }
 0x29d   :  { %v2027_v39 = vunpack.i.h.bf16 %v2025_v22  ;;  %v2026_v40 = vunpack.i.l.bf16 %v2025_v22 }
 0x29f   :  { %v1068_v55 = vsel %vm1065_vm6, %v1059_v12, %v2026_v40  ;;  %v1069_v14 = vsel %vm1065_vm6, %v1060_v46, %v2027_v39 }
 0x2a0   :  { %v2030_v25 = vpop.permute.xlu1 %2029  ;;  %v1077_v0 = vsel %vm1074_vm7, %v1068_v55, %v2011_v59  ;;  %v1078_v16 = vsel %vm1074_vm7, %v1069_v14, %v2012_v58 }
 0x2a1   :  { %v2032_v48 = vunpack.i.h.bf16 %v2030_v25  ;;  %v2031_v49 = vunpack.i.l.bf16 %v2030_v25 }
 0x2a3   :  { %v1070_v2 = vsel %vm1065_vm6, %v1061_v57, %v2031_v49  ;;  %v1071_v17 = vsel %vm1065_vm6, %v1062_v15, %v2032_v48 }
 0x2a4   :  { %v2606_v31 = vpop.permute.xlu1 %2034  ;;  %v1079_v21 = vsel %vm1074_vm7, %v1070_v2, %v2016_v7  ;;  %v1080_v22 = vsel %vm1074_vm7, %v1071_v17, %v2017_v6 }
 0x2a5   :  { %v2037_v63 = vunpack.i.h.bf16 %v2606_v31  ;;  %v2036_v3 = vunpack.i.l.bf16 %v2606_v31 }
 0x2a7   :  { %v1072_v26 = vsel %vm1065_vm6, %v1063_v20, %v2036_v3  ;;  %v1073_v27 = vsel %vm1065_vm6, %v1064_v19, %v2037_v63 }
 0x2a8   :  { %v1081_v23 = vsel %vm1074_vm7, %v1072_v26, %v2056_v29  ;;  %v1082_v32 = vsel %vm1074_vm7, %v1073_v27, %v2057_v28 }
 0x2ac   :  { %v2040_v45 = vpop.permute.xlu1 %2039 }
 0x2ad   :  { %v2042_v13 = vunpack.i.h.bf16 %v2040_v45  ;;  %v2041_v47 = vunpack.i.l.bf16 %v2040_v45 }
 0x2af   :  { %v1084_v53 = vsel %vm1083_vm8, %v1075_v50, %v2041_v47  ;;  %v1085_v54 = vsel %vm1083_vm8, %v1076_v51, %v2042_v13 }
 0x2b0   :  { %v2045_v60 = vpop.permute.xlu1 %2044  ;;  %1917 = vmatprep.mubr.f32.mxu1 %v1084_v53  ;;  %1961 = vmatprep.mubr.f32.mxu0 %v1084_v53 }
 0x2b1   :  { %v2047_v1 = vunpack.i.h.bf16 %v2045_v60  ;;  %v2046_v56 = vunpack.i.l.bf16 %v2045_v60  ;;  %1918 = vmatmul.mubr.f32.vlgmr.msra.gmra.mxu1 %v1085_v54  ;;  %1962 = vmatmul.mubr.f32.vlgmr.msra.gmra.mxu0 %v1085_v54 }
 0x2b3   :  { %v1086_v4 = vsel %vm1083_vm8, %v1077_v0, %v2046_v56  ;;  %v1087_v5 = vsel %vm1083_vm8, %v1078_v16, %v2047_v1 }
 0x2b4   :  { %v2050_v8 = vpop.permute.xlu1 %2049  ;;  %1920 = vmatprep.mubr.f32.mxu1 %v1086_v4  ;;  %1964 = vmatprep.mubr.f32.mxu0 %v1086_v4 }
 0x2b5   :  { %v2052_v10 = vunpack.i.h.bf16 %v2050_v8  ;;  %v2051_v11 = vunpack.i.l.bf16 %v2050_v8  ;;  %1921 = vmatmul.mubr.f32.gmra.mxu1 %v1087_v5  ;;  %1965 = vmatmul.mubr.f32.gmra.mxu0 %v1087_v5 }
 0x2b7   :  { %v1088_v24 = vsel %vm1083_vm8, %v1079_v21, %v2051_v11  ;;  %v1089_v25 = vsel %vm1083_vm8, %v1080_v22, %v2052_v10 }
 0x2b8   :  { %v2060_v30 = vpop.permute.xlu1 %2059  ;;  %1923 = vmatprep.mubr.f32.mxu1 %v1088_v24  ;;  %1967 = vmatprep.mubr.f32.mxu0 %v1088_v24 }
 0x2b9   :  { %v2062_v18 = vunpack.i.h.bf16 %v2060_v30  ;;  %v2061_v31 = vunpack.i.l.bf16 %v2060_v30  ;;  %1924 = vmatmul.mubr.f32.gmra.mxu1 %v1089_v25  ;;  %1968 = vmatmul.mubr.f32.gmra.mxu0 %v1089_v25 }
 0x2bb   :  { %v1090_v33 = vsel %vm1083_vm8, %v1081_v23, %v2061_v31  ;;  %v1091_v34 = vsel %vm1083_vm8, %v1082_v32, %v2062_v18 }
 0x2bc   :  { %1926 = vmatprep.mubr.f32.mxu1 %v1090_v33  ;;  %1970 = vmatprep.mubr.f32.mxu0 %v1090_v33 }
 0x2bd   :  { %1927 = vmatmul.mubr.f32.gmra.mxu1 %v1091_v34  ;;  %1971 = vmatmul.mubr.f32.gmra.mxu0 %v1091_v34 }
 0x371   :  { %v1919_v35 = vpop.f32.mrf.mxu1  ;;  %v1963_v36 = vpop.f32.mrf.mxu0 }
 0x373   :  { %v1174_v37 = vpop.f32.mrf.mxu1  ;;  %v1295_v38 = vpop.f32.mrf.mxu0 }
 0x374   :  { %v1535_v39 = vpack.c.bf16 %v1919_v35, %v1174_v37  ;;  %v1555_v40 = vpack.c.bf16 %v1963_v36, %v1295_v38 }
 0x375   :  { %v1922_v41 = vpop.f32.mrf.mxu1  ;;  %v1966_v42 = vpop.f32.mrf.mxu0 }
 0x376   :  { %1536 = vst [vmem:[#allocation2] sm:$0xff] %v1535_v39   ;;  %1575 = vst [vmem:[#allocation2 + $0x20] sm:$0xff] %v1555_v40  }
 0x377   :  { %v1184_v43 = vpop.f32.mrf.mxu1  ;;  %v1305_v44 = vpop.f32.mrf.mxu0 }
 0x378   :  { %v1540_v45 = vpack.c.bf16 %v1922_v41, %v1184_v43  ;;  %v1560_v46 = vpack.c.bf16 %v1966_v42, %v1305_v44 }
 0x379   :  { %v1925_v12 = vpop.f32.mrf.mxu1  ;;  %v1969_v13 = vpop.f32.mrf.mxu0 }
 0x37a   :  { %1572 = vst [vmem:[#allocation2 + $0x8] sm:$0xff] %v1540_v45   ;;  %1576 = vst [vmem:[#allocation2 + $0x28] sm:$0xff] %v1560_v46  }
 0x37b   :  { %v1194_v47 = vpop.f32.mrf.mxu1  ;;  %v1315_v48 = vpop.f32.mrf.mxu0 }
 0x37c   :  { %v1545_v49 = vpack.c.bf16 %v1925_v12, %v1194_v47  ;;  %v1565_v50 = vpack.c.bf16 %v1969_v13, %v1315_v48 }
 0x37d   :  { %v1928_v51 = vpop.f32.mrf.mxu1  ;;  %v1972_v52 = vpop.f32.mrf.mxu0 }
 0x37e   :  { %1573 = vst [vmem:[#allocation2 + $0x10] sm:$0xff] %v1545_v49   ;;  %1577 = vst [vmem:[#allocation2 + $0x30] sm:$0xff] %v1565_v50  }
 0x37f   :  { %v1204_v53 = vpop.f32.mrf.mxu1  ;;  %v1325_v54 = vpop.f32.mrf.mxu0 }
 0x380   :  { %v1550_v55 = vpack.c.bf16 %v1928_v51, %v1204_v53  ;;  %v1570_v14 = vpack.c.bf16 %v1972_v52, %v1325_v54 }
 0x382   :  { %1574 = vst [vmem:[#allocation2 + $0x18] sm:$0xff] %v1550_v55   ;;  %1578 = vst [vmem:[#allocation2 + $0x38] sm:$0xff] %v1570_v14  }
 0x383   :  { %2074 = shalt.err (!%p2071_p4)
}
 0x384   :  { %s2092_s6 = smov 4  }
 0x385   :  { %1425 = dma.vmem_to_hbm [thread:$0]  %s1420_s3, 1024, %s2668_s11, [#allocation3], %s2087_s12, %s2087_s12, %s2092_s6  }
 0x386   :  { %2083 = dma.done.wait [#allocation3], 1024  }
 0x387   :  { %2084 = vsyncadd [#allocation3], 4294966272 }
 0x388   :  { %1429 = vsyncpa [#allocation3], 1 }

</bundles_post_ra>
